<compile_context>
chip_gen: v5e
topology: v5e:2x2
jax: 0.10.0
libtpu: 0.0.40
codegen_flags: <defaults>
</compile_context>

<pallas_src>
import math

import jax
import jax.numpy as jnp
from jax.experimental import pallas as pl
from jax.experimental.pallas import tpu as pltpu

N_FEAT = 2      # `n` in the PyTorch script
HIDDEN = 512
PAD = 128       # lane-dense padded width for the n=2 state/output columns
N_STEPS = 10    # `N` in the PyTorch script


# ---------------------------------------------------------------------------
# Kernel bodies
# ---------------------------------------------------------------------------
def _hoisted_operands(w1_ref, b1_ref, w2p_ref, b2p_ref, batch):
    """Load weights and pre-broadcast the loop-invariant operands once."""
    w1_r0 = jnp.broadcast_to(w1_ref[0:1, :], (batch, HIDDEN))
    w1_r1 = jnp.broadcast_to(w1_ref[1:2, :], (batch, HIDDEN))
    b1_b = jnp.broadcast_to(b1_ref[...], (batch, HIDDEN))
    w2 = w2p_ref[...]
    b2_b = jnp.broadcast_to(b2p_ref[...], (batch, PAD))
    return w1_r0, w1_r1, b1_b, w2, b2_b


def _mlp(x, w1_r0, w1_r1, b1_b, w2, b2_b):
    """forward(x): only the first N_FEAT columns of the padded x are live.

    First layer (K = 2): VPU broadcast-FMAs (no wasteful zero-padded MXU pass).
    Second layer (K = 512): MXU matmul into the lane-padded (PAD-wide) output.
    Columns N_FEAT..PAD-1 of w2/b2 are zero, so the result stays zero there.
    """
    h = x[:, 0:1] * w1_r0 + x[:, 1:2] * w1_r1 + b1_b
    h = jnp.maximum(h, 0.0)                                    # ReLU on the VPU
    return jnp.dot(h, w2, preferred_element_type=jnp.float32) + b2_b


def _fwd_kernel(x_ref, w1_ref, b1_ref, w2p_ref, b2p_ref, o_ref):
    # Single forward pass: padded x [B, PAD] -> o [B, PAD] (lane-dense store).
    B = o_ref.shape[0]
    ops = _hoisted_operands(w1_ref, b1_ref, w2p_ref, b2p_ref, B)
    o_ref[...] = _mlp(x_ref[...], *ops)


def _unroll_kernel(x_ref, w1_ref, b1_ref, w2p_ref, b2p_ref, o_ref):
    # Fused rollout in a single invocation (no grid):
    #   state carried in registers, static fully-unrolled step loop,
    #   output written directly in its final [B, steps, PAD] layout.
    B, steps, _ = o_ref.shape
    ops = _hoisted_operands(w1_ref, b1_ref, w2p_ref, b2p_ref, B)

    x = x_ref[...]                       # one [B, PAD] vreg of state
    o_ref[:, 0, :] = x                   # pred[:, 0] = x0  (full 128-lane rows)

    # steps is a static Python int -> the loop is fully unrolled at trace time
    # and every store index below is static.
    for k in range(steps - 1):
        x = x + _mlp(x, *ops)            # residual add fused in-kernel
        o_ref[:, k + 1, :] = x           # pred[:, k+1] = x


# ---------------------------------------------------------------------------
# Wrappers
# ---------------------------------------------------------------------------
_VMEM = pl.BlockSpec(memory_space=pltpu.MemorySpace.VMEM)


def _pad_lanes(x):
    """Pad [B, N_FEAT] -> [B, PAD] once so in-kernel loads are full lane width."""
    B = x.shape[0]
    return jnp.zeros((B, PAD), jnp.float32).at[:, :N_FEAT].set(
        x.astype(jnp.float32))


def _ensure_padded(params):
    """Accept raw or pre-padded second-layer weights (usage-hazard guard)."""
    w1, b1, w2, b2 = params
    b1 = jnp.reshape(b1, (1, HIDDEN)).astype(jnp.float32)
    b2 = jnp.reshape(b2, (1, -1)).astype(jnp.float32)
    if w2.shape[1] != PAD:
        w2 = jnp.zeros((HIDDEN, PAD), jnp.float32).at[:, :N_FEAT].set(w2)
    if b2.shape[1] != PAD:
        b2 = jnp.zeros((1, PAD), jnp.float32).at[:, :N_FEAT].set(b2)
    return w1.astype(jnp.float32), b1, w2.astype(jnp.float32), b2


def resnet_forward(x, params):
    """Pallas TPU implementation of resnet.forward."""
    w1, b1, w2p, b2p = _ensure_padded(params)
    B = x.shape[0]
    x_pad = _pad_lanes(x)

    flops = 2 * B * N_FEAT * HIDDEN + 2 * B * HIDDEN * N_FEAT
    nbytes = 4 * (x_pad.size + w1.size + b1.size + w2p.size + b2p.size + B * PAD)

    y_pad = pl.pallas_call(
        _fwd_kernel,
        out_shape=jax.ShapeDtypeStruct((B, PAD), jnp.float32),
        in_specs=[_VMEM, _VMEM, _VMEM, _VMEM, _VMEM],
        out_specs=_VMEM,
        cost_estimate=pl.CostEstimate(
            flops=flops, transcendentals=0, bytes_accessed=nbytes),
    )(x_pad, w1, b1, w2p, b2p)
    return y_pad[:, :N_FEAT].astype(x.dtype)


def resnet_unroll(x0, steps, params):
    """Mirror of resnet.unroll: one pallas_call, step loop fused in-kernel."""
    w1, b1, w2p, b2p = _ensure_padded(params)
    B = x0.shape[0]
    x_pad = _pad_lanes(x0)

    flops = (steps - 1) * (2 * B * N_FEAT * HIDDEN + 2 * B * HIDDEN * N_FEAT)
    nbytes = 4 * (x_pad.size + w1.size + b1.size + w2p.size + b2p.size
                  + steps * B * PAD)

    out = pl.pallas_call(
        _unroll_kernel,
        out_shape=jax.ShapeDtypeStruct((B, steps, PAD), jnp.float32),
        in_specs=[_VMEM, _VMEM, _VMEM, _VMEM, _VMEM],
        out_specs=_VMEM,
        cost_estimate=pl.CostEstimate(
            flops=flops, transcendentals=0, bytes_accessed=nbytes),
    )(x_pad, w1, b1, w2p, b2p)

    # [B, steps, PAD] -> [B, steps, n]   (final layout; no transpose needed)
    return out[:, :, :N_FEAT].astype(x0.dtype)


# ---------------------------------------------------------------------------
# Parameter construction (matches nn.Linear init, weights stored as (in, out))
# ---------------------------------------------------------------------------
def init_params(key):
    k1, k2, k3, k4 = jax.random.split(key, 4)
    bound1 = 1.0 / math.sqrt(N_FEAT)
    bound2 = 1.0 / math.sqrt(HIDDEN)
    w1 = jax.random.uniform(k1, (N_FEAT, HIDDEN), jnp.float32, -bound1, bound1)
    b1 = jax.random.uniform(k2, (1, HIDDEN), jnp.float32, -bound1, bound1)
    w2 = jax.random.uniform(k3, (HIDDEN, N_FEAT), jnp.float32, -bound2, bound2)
    b2 = jax.random.uniform(k4, (1, N_FEAT), jnp.float32, -bound2, bound2)
    return w1, b1, w2, b2


def pad_params(w1, b1, w2, b2):
    """Zero-pad the output-layer weights to PAD lanes (done once)."""
    w2p = jnp.zeros((HIDDEN, PAD), jnp.float32).at[:, :N_FEAT].set(w2)
    b2p = jnp.zeros((1, PAD), jnp.float32).at[:, :N_FEAT].set(b2)
    return w1, b1, w2p, b2p


# ---------------------------------------------------------------------------
if __name__ == "__main__":
    key = jax.random.PRNGKey(0)
    kx, kp = jax.random.split(key)

    B = 8
    x = jax.random.normal(kx, (B, N_FEAT), jnp.float32)
    w1, b1, w2, b2 = init_params(kp)
    params = pad_params(w1, b1, w2, b2)     # pad once on the host

    # --- single forward pass -------------------------------------------------
    y = resnet_forward(x, params)
    jax.block_until_ready(y)
    y_ref = jnp.maximum(x @ w1 + b1, 0.0) @ w2 + b2
    assert y.shape == (B, N_FEAT)
    assert jnp.allclose(y, y_ref, rtol=1e-3, atol=1e-3), "forward mismatch"

    # --- fused unroll (single pallas_call, loop fused in-kernel) -------------
    traj = resnet_unroll(x, N_STEPS, params)
    jax.block_until_ready(traj)
    assert traj.shape == (B, N_STEPS, N_FEAT)

    # Pure-JAX reference of resnet.unroll
    preds = [x]
    xr = x
    for _ in range(N_STEPS - 1):
        xr = xr + (jnp.maximum(xr @ w1 + b1, 0.0) @ w2 + b2)
        preds.append(xr)
    traj_ref = jnp.stack(preds, axis=1)
    assert jnp.allclose(traj, traj_ref, rtol=1e-3, atol=1e-3), "unroll mismatch"

    print("KERNEL_OK")
</pallas_src>

<mosaic_0001>
module attributes {stable_mosaic.version = 11 : i64} {
  func.func @_fwd_kernel(%arg0: memref<8x128xf32, #tpu.memory_space<vmem>>, %arg1: memref<2x512xf32, #tpu.memory_space<vmem>>, %arg2: memref<1x512xf32, #tpu.memory_space<vmem>>, %arg3: memref<512x128xf32, #tpu.memory_space<vmem>>, %arg4: memref<1x128xf32, #tpu.memory_space<vmem>>, %arg5: memref<8x128xf32, #tpu.memory_space<vmem>>) attributes {dimension_semantics = [], scalar_prefetch = 0 : i64, scratch_operands = 0 : i64, tpu.core_type = #tpu.core_type<tc>} {
    %c0 = arith.constant 0 : index
    %c0_0 = arith.constant 0 : index
    %0 = vector.load %arg1[%c0, %c0_0] : memref<2x512xf32, #tpu.memory_space<vmem>>, vector<1x512xf32>
    %1 = vector.shape_cast %0 : vector<1x512xf32> to vector<1x512xf32>
    %2 = vector.broadcast %1 : vector<1x512xf32> to vector<8x512xf32>
    %c1 = arith.constant 1 : index
    %c0_1 = arith.constant 0 : index
    %3 = vector.load %arg1[%c1, %c0_1] : memref<2x512xf32, #tpu.memory_space<vmem>>, vector<1x512xf32>
    %4 = vector.shape_cast %3 : vector<1x512xf32> to vector<1x512xf32>
    %5 = vector.broadcast %4 : vector<1x512xf32> to vector<8x512xf32>
    %c0_2 = arith.constant 0 : index
    %c0_3 = arith.constant 0 : index
    %6 = vector.load %arg2[%c0_2, %c0_3] : memref<1x512xf32, #tpu.memory_space<vmem>>, vector<1x512xf32>
    %7 = vector.shape_cast %6 : vector<1x512xf32> to vector<1x512xf32>
    %8 = vector.broadcast %7 : vector<1x512xf32> to vector<8x512xf32>
    %c0_4 = arith.constant 0 : index
    %c0_5 = arith.constant 0 : index
    %9 = vector.load %arg3[%c0_4, %c0_5] : memref<512x128xf32, #tpu.memory_space<vmem>>, vector<512x128xf32>
    %c0_6 = arith.constant 0 : index
    %c0_7 = arith.constant 0 : index
    %10 = vector.load %arg4[%c0_6, %c0_7] : memref<1x128xf32, #tpu.memory_space<vmem>>, vector<1x128xf32>
    %11 = vector.shape_cast %10 : vector<1x128xf32> to vector<1x128xf32>
    %12 = vector.broadcast %11 : vector<1x128xf32> to vector<8x128xf32>
    %c0_8 = arith.constant 0 : index
    %c0_9 = arith.constant 0 : index
    %13 = vector.load %arg0[%c0_8, %c0_9] : memref<8x128xf32, #tpu.memory_space<vmem>>, vector<8x128xf32>
    %14 = vector.extract_strided_slice %13 {offsets = [0, 0], sizes = [8, 1], strides = [1, 1]} : vector<8x128xf32> to vector<8x1xf32>
    %15 = vector.broadcast %14 : vector<8x1xf32> to vector<8x512xf32>
    %16 = arith.mulf %15, %2 : vector<8x512xf32>
    %17 = vector.extract_strided_slice %13 {offsets = [0, 1], sizes = [8, 1], strides = [1, 1]} : vector<8x128xf32> to vector<8x1xf32>
    %18 = vector.broadcast %17 : vector<8x1xf32> to vector<8x512xf32>
    %19 = arith.mulf %18, %5 : vector<8x512xf32>
    %20 = arith.addf %16, %19 : vector<8x512xf32>
    %21 = arith.addf %20, %8 : vector<8x512xf32>
    %cst = arith.constant 0.000000e+00 : f32
    %22 = vector.broadcast %cst : f32 to vector<8x512xf32>
    %23 = arith.maximumf %21, %22 : vector<8x512xf32>
    %cst_10 = arith.constant dense<0.000000e+00> : vector<8x128xf32>
    %24 = tpu.matmul %23, %9, %cst_10 {dimension_numbers = #tpu.dot_dimension_numbers<[1], [0], [0], [1], [0, 0, 1, 1], [], []>} : vector<8x512xf32>, vector<512x128xf32>, vector<8x128xf32> -> vector<8x128xf32>
    %25 = arith.addf %24, %12 : vector<8x128xf32>
    %c0_11 = arith.constant 0 : index
    %c0_12 = arith.constant 0 : index
    %26 = vector.load %arg5[%c0_11, %c0_12] : memref<8x128xf32, #tpu.memory_space<vmem>>, vector<8x128xf32>
    tpu.vector_store %arg5[%c0_11, %c0_12], %25 {strides = array<i32>} : memref<8x128xf32, #tpu.memory_space<vmem>>, vector<8x128xf32>,
    return
  }
}

</mosaic_0001>

<bundles_post_ra>
// kernel: tpu_custom_call.1
= control target key start
LH: loop header
LB: loop body
LE: loop exit
PB: predicated region body
PF: predicated region fallthrough
CT: control target
= control target key end

     0   :  { %10 = vsyncpa [#allocation3], 0  ;;  %s504_s0 = inlined_call_operand.hbm [shape: f32[8,128], index: 0, kind: input, shape index: {}]   ;;  %s505_s1 = inlined_call_operand.hbm [shape: f32[2,512], index: 1, kind: input, shape index: {}]   ;;  %s506_s2 = inlined_call_operand.hbm [shape: f32[1,512], index: 2, kind: input, shape index: {}]   ;;  %s507_s3 = inlined_call_operand.hbm [shape: f32[512,128], index: 3, kind: input, shape index: {}]   ;;  %s508_s4 = inlined_call_operand.vmem [shape: f32[1,128], index: 4, kind: input, shape index: {}]   ;;  %s509_s5 = inlined_call_operand.hbm [shape: f32[8,128], index: 5, kind: output, shape index: {}]  }
   0x1   :  { %11 = vsyncpa [#allocation6], 0 }
   0x2   :  { %12 = vsyncpa [#allocation9], 0  ;;  %s30_s20 = sshll.u32 %s505_s1, 4  ;;  %s31_s20 = int_to_ptr.hbm [resolvable:$true] %s30_s20 }
   0x3   :  { %13 = vsyncpa [#allocation4], 0  ;;  %s447_s21 = smov [#allocation5]   ;;  %s19_s25 = sshll.u32 %s504_s0, 4  ;;  %s20_s25 = int_to_ptr.hbm [resolvable:$true] %s19_s25 }
   0x4   :  { %s32_s22 = sshll.u32 %s447_s21, 4  ;;  %s448_s26 = smov [#allocation2]   ;;  %s33_s22 = int_to_ptr.vmem [resolvable:$true] %s32_s22 }
   0x5   :  { %35 = dma.hbm_to_vmem [thread:$0]  %s31_s20, 128, %s33_s22, [#allocation6]  }
   0x6   :  { %s21_s27 = sshll.u32 %s448_s26, 4  ;;  %s41_s30 = sshll.u32 %s506_s2, 4  ;;  %s22_s27 = int_to_ptr.vmem [resolvable:$true] %s21_s27  ;;  %s42_s30 = int_to_ptr.hbm [resolvable:$true] %s41_s30 }
   0x7   :  { %24 = dma.hbm_to_vmem [thread:$0]  %s20_s25, 128, %s22_s27, [#allocation3]  }
   0x8   :  { %s51_s7 = sshll.u32 %s507_s3, 4  ;;  %s449_s8 = smov [#allocation7]   ;;  %s52_s7 = int_to_ptr.hbm [resolvable:$true] %s51_s7 }
   0x9   :  { %s43_s9 = sshll.u32 %s449_s8, 4  ;;  %s450_s0 = smov [#allocation8]   ;;  %s44_s9 = int_to_ptr.vmem [resolvable:$true] %s43_s9 }
   0xa   :  { %46 = dma.hbm_to_vmem [thread:$0]  %s42_s30, 64, %s44_s9, [#allocation6]  }
   0xb   :  { %s53_s10 = sshll.u32 %s450_s0, 4  ;;  %s451_s11 = smov 128   ;;  %s54_s10 = int_to_ptr.vmem [resolvable:$true] %s53_s10 }
   0xc   :  { %s452_s12 = smov 8  }
   0xd   :  { %59 = dma.hbm_to_vmem [thread:$0]  %s52_s7, 8192, %s54_s10, [#allocation9], %s451_s11, %s451_s11, %s452_s12  }
   0xe   :  { %439 = dma.done.wait [#allocation3], 128  }
   0xf   :  { %440 = vsyncadd [#allocation3], 4294967168 }
  0x10   :  { %441 = dma.done.wait [#allocation6], 192  }
  0x11   :  { %442 = vsyncadd [#allocation6], 4294967104 }
  0x12   :  { %443 = dma.done.wait [#allocation9], 8192  }
  0x13   :  { %444 = vsyncadd [#allocation9], 4294959104  ;;  %v453_v0 = vmov 0   ;;  %v177_v1 = vld [vmem:[#allocation2] sm:$0xff]  ;;  %v124_v2 = vld [vmem:[#allocation8 + $0x78] sm:$0xff]  ;;  %v454_v21 = vmov 1  }
  0x14   :  { %316 = vset.pattern.permute.xlu0 %v453_v0  ;;  %v140_v3 = vld [vmem:[#allocation8 + $0xf8] sm:$0xff]  ;;  %207 = vmatpush.msra.mxu0 %v124_v2  ;;  %v123_v6 = vld [vmem:[#allocation8 + $0x70] sm:$0xff]  ;;  %v122_v10 = vld [vmem:[#allocation8 + $0x68] sm:$0xff]  ;;  %s455_s13 = smov [#allocation10]   ;;  %s295_s17 = sshll.u32 %s509_s5, 4  ;;  %s296_s17 = int_to_ptr.hbm [resolvable:$true] %s295_s17 }
  0x15   :  { %180 = vperm.xlu0 %316, %v177_v1   ;;  %v156_v4 = vld [vmem:[#allocation8 + $0x178] sm:$0xff]  ;;  %227 = vmatpush.msra.mxu1 %v140_v3  ;;  %v139_v7 = vld [vmem:[#allocation8 + $0xf0] sm:$0xff]  ;;  %v138_v11 = vld [vmem:[#allocation8 + $0xe8] sm:$0xff]  ;;  %s293_s14 = sshll.u32 %s455_s13, 4  ;;  %s294_s14 = int_to_ptr.vmem [resolvable:$true] %s293_s14 }
  0x16   :  { %v172_v5 = vld [vmem:[#allocation8 + $0x1f8] sm:$0xff]  ;;  %247 = vmatpush.msra.mxu2 %v156_v4  ;;  %v155_v8 = vld [vmem:[#allocation8 + $0x170] sm:$0xff]  ;;  %208 = vmatpush.msra.mxu0 %v123_v6  ;;  %v154_v12 = vld [vmem:[#allocation8 + $0x168] sm:$0xff] }
  0x17   :  { %v171_v9 = vld [vmem:[#allocation8 + $0x1f0] sm:$0xff]  ;;  %267 = vmatpush.msra.mxu3 %v172_v5  ;;  %228 = vmatpush.msra.mxu1 %v139_v7  ;;  %v170_v13 = vld [vmem:[#allocation8 + $0x1e8] sm:$0xff]  ;;  %v121_v14 = vld [vmem:[#allocation8 + $0x60] sm:$0xff] }
  0x18   :  { %248 = vmatpush.msra.mxu2 %v155_v8  ;;  %209 = vmatpush.msra.mxu0 %v122_v10  ;;  %v137_v15 = vld [vmem:[#allocation8 + $0xe0] sm:$0xff]  ;;  %v120_v18 = vld [vmem:[#allocation8 + $0x58] sm:$0xff]  ;;  %v119_v23 = vld [vmem:[#allocation8 + $0x50] sm:$0xff] }
  0x19   :  { %268 = vmatpush.msra.mxu3 %v171_v9  ;;  %v153_v16 = vld [vmem:[#allocation8 + $0x160] sm:$0xff]  ;;  %229 = vmatpush.msra.mxu1 %v138_v11  ;;  %v136_v19 = vld [vmem:[#allocation8 + $0xd8] sm:$0xff]  ;;  %v135_v24 = vld [vmem:[#allocation8 + $0xd0] sm:$0xff] }
  0x1a   :  { %249 = vmatpush.msra.mxu2 %v154_v12  ;;  %v169_v17 = vld [vmem:[#allocation8 + $0x1e0] sm:$0xff]  ;;  %210 = vmatpush.msra.mxu0 %v121_v14  ;;  %v152_v20 = vld [vmem:[#allocation8 + $0x158] sm:$0xff]  ;;  %v151_v25 = vld [vmem:[#allocation8 + $0x150] sm:$0xff] }
  0x1b   :  { %269 = vmatpush.msra.mxu3 %v170_v13  ;;  %230 = vmatpush.msra.mxu1 %v137_v15  ;;  %v168_v22 = vld [vmem:[#allocation8 + $0x1d8] sm:$0xff]  ;;  %v167_v26 = vld [vmem:[#allocation8 + $0x1d0] sm:$0xff]  ;;  %v118_v27 = vld [vmem:[#allocation8 + $0x48] sm:$0xff] }
  0x1c   :  { %250 = vmatpush.msra.mxu2 %v153_v16  ;;  %211 = vmatpush.msra.mxu0 %v120_v18  ;;  %v134_v28 = vld [vmem:[#allocation8 + $0xc8] sm:$0xff]  ;;  %v117_v31 = vld [vmem:[#allocation8 + $0x40] sm:$0xff]  ;;  %v116_v35 = vld [vmem:[#allocation8 + $0x38] sm:$0xff] }
  0x1d   :  { %317 = vset.pattern.permute.xlu0 %v454_v21  ;;  %270 = vmatpush.msra.mxu3 %v169_v17  ;;  %v150_v29 = vld [vmem:[#allocation8 + $0x148] sm:$0xff]  ;;  %v133_v32 = vld [vmem:[#allocation8 + $0xc0] sm:$0xff]  ;;  %v132_v36 = vld [vmem:[#allocation8 + $0xb8] sm:$0xff] }
  0x1e   :  { %188 = vperm.xlu0 %317, %v177_v1   ;;  %231 = vmatpush.msra.mxu1 %v136_v19  ;;  %v166_v30 = vld [vmem:[#allocation8 + $0x1c8] sm:$0xff]  ;;  %v149_v33 = vld [vmem:[#allocation8 + $0x140] sm:$0xff]  ;;  %v148_v37 = vld [vmem:[#allocation8 + $0x138] sm:$0xff] }
  0x1f   :  { %251 = vmatpush.msra.mxu2 %v152_v20  ;;  %271 = vmatpush.msra.mxu3 %v168_v22  ;;  %v165_v34 = vld [vmem:[#allocation8 + $0x1c0] sm:$0xff]  ;;  %v164_v38 = vld [vmem:[#allocation8 + $0x1b8] sm:$0xff]  ;;  %v115_v39 = vld [vmem:[#allocation8 + $0x30] sm:$0xff] }
  0x20   :  { %212 = vmatpush.msra.mxu0 %v119_v23  ;;  %232 = vmatpush.msra.mxu1 %v135_v24  ;;  %v131_v40 = vld [vmem:[#allocation8 + $0xb0] sm:$0xff]  ;;  %v114_v43 = vld [vmem:[#allocation8 + $0x28] sm:$0xff]  ;;  %v113_v47 = vld [vmem:[#allocation8 + $0x20] sm:$0xff] }
  0x21   :  { %252 = vmatpush.msra.mxu2 %v151_v25  ;;  %272 = vmatpush.msra.mxu3 %v167_v26  ;;  %v147_v41 = vld [vmem:[#allocation8 + $0x130] sm:$0xff]  ;;  %v130_v44 = vld [vmem:[#allocation8 + $0xa8] sm:$0xff]  ;;  %v129_v48 = vld [vmem:[#allocation8 + $0xa0] sm:$0xff] }
  0x22   :  { %213 = vmatpush.msra.mxu0 %v118_v27  ;;  %233 = vmatpush.msra.mxu1 %v134_v28  ;;  %v163_v42 = vld [vmem:[#allocation8 + $0x1b0] sm:$0xff]  ;;  %v146_v45 = vld [vmem:[#allocation8 + $0x128] sm:$0xff]  ;;  %v145_v49 = vld [vmem:[#allocation8 + $0x120] sm:$0xff] }
  0x23   :  { %253 = vmatpush.msra.mxu2 %v150_v29  ;;  %273 = vmatpush.msra.mxu3 %v166_v30  ;;  %v162_v46 = vld [vmem:[#allocation8 + $0x1a8] sm:$0xff]  ;;  %v161_v50 = vld [vmem:[#allocation8 + $0x1a0] sm:$0xff]  ;;  %v112_v51 = vld [vmem:[#allocation8 + $0x18] sm:$0xff] }
  0x24   :  { %214 = vmatpush.msra.mxu0 %v117_v31  ;;  %234 = vmatpush.msra.mxu1 %v133_v32  ;;  %v128_v52 = vld [vmem:[#allocation8 + $0x98] sm:$0xff]  ;;  %v111_v55 = vld [vmem:[#allocation8 + $0x10] sm:$0xff]  ;;  %v110_v59 = vld [vmem:[#allocation8 + $0x8] sm:$0xff] }
  0x25   :  { %254 = vmatpush.msra.mxu2 %v149_v33  ;;  %274 = vmatpush.msra.mxu3 %v165_v34  ;;  %v144_v53 = vld [vmem:[#allocation8 + $0x118] sm:$0xff]  ;;  %v127_v56 = vld [vmem:[#allocation8 + $0x90] sm:$0xff]  ;;  %v126_v60 = vld [vmem:[#allocation8 + $0x88] sm:$0xff] }
  0x26   :  { %215 = vmatpush.msra.mxu0 %v116_v35  ;;  %235 = vmatpush.msra.mxu1 %v132_v36  ;;  %v160_v54 = vld [vmem:[#allocation8 + $0x198] sm:$0xff]  ;;  %v143_v57 = vld [vmem:[#allocation8 + $0x110] sm:$0xff]  ;;  %v142_v61 = vld [vmem:[#allocation8 + $0x108] sm:$0xff] }
  0x27   :  { %255 = vmatpush.msra.mxu2 %v148_v37  ;;  %275 = vmatpush.msra.mxu3 %v164_v38  ;;  %v159_v58 = vld [vmem:[#allocation8 + $0x190] sm:$0xff]  ;;  %v158_v62 = vld [vmem:[#allocation8 + $0x188] sm:$0xff]  ;;  %v109_v63 = vld [vmem:[#allocation8] sm:$0xff] }
  0x28   :  { %216 = vmatpush.msra.mxu0 %v115_v39  ;;  %236 = vmatpush.msra.mxu1 %v131_v40  ;;  %v125_v0 = vld [vmem:[#allocation8 + $0x80] sm:$0xff]  ;;  %v78_v4 = vld [vmem:[#allocation5] ss:$2 sm:$0xf]  ;;  %v99_v10 = vld [vmem:[#allocation7] sm:$0xf] }
  0x29   :  { %256 = vmatpush.msra.mxu2 %v147_v41  ;;  %276 = vmatpush.msra.mxu3 %v163_v42  ;;  %v141_v1 = vld [vmem:[#allocation8 + $0x100] sm:$0xff]  ;;  %v89_v5 = vld [vmem:[#allocation5 + $0x1] ss:$2 sm:$0xf]  ;;  %v80_v6 = vperm.slane %v78_v4, 0  ;;  %v81_v7 = vperm.slane %v78_v4, 1 }
  0x2a   :  { %217 = vmatpush.msra.mxu0 %v114_v43  ;;  %237 = vmatpush.msra.mxu1 %v130_v44  ;;  %v157_v2 = vld [vmem:[#allocation8 + $0x180] sm:$0xff]  ;;  %v82_v8 = vperm.slane %v78_v4, 2  ;;  %v83_v9 = vperm.slane %v78_v4, 3  ;;  %v91_v11 = vperm.slane %v89_v5, 0  ;;  %v92_v12 = vperm.slane %v89_v5, 1 }
  0x2b   :  { %257 = vmatpush.msra.mxu2 %v146_v45  ;;  %277 = vmatpush.msra.mxu3 %v162_v46  ;;  %v93_v13 = vperm.slane %v89_v5, 2  ;;  %v94_v14 = vperm.slane %v89_v5, 3  ;;  %v101_v15 = vperm.slane %v99_v10, 0  ;;  %v102_v16 = vperm.slane %v99_v10, 1  ;;  %v318_v40 = vld [vmem:[%s508_s4] ss:$0 sm:$0xff] }
  0x2c   :  { %218 = vmatpush.msra.mxu0 %v113_v47  ;;  %238 = vmatpush.msra.mxu1 %v129_v48  ;;  %v103_v17 = vperm.slane %v99_v10, 2  ;;  %v104_v18 = vperm.slane %v99_v10, 3 }
  0x2d   :  { %258 = vmatpush.msra.mxu2 %v145_v49  ;;  %278 = vmatpush.msra.mxu3 %v161_v50 }
  0x2e   :  { %219 = vmatpush.msra.mxu0 %v112_v51  ;;  %239 = vmatpush.msra.mxu1 %v128_v52 }
  0x2f   :  { %259 = vmatpush.msra.mxu2 %v144_v53  ;;  %279 = vmatpush.msra.mxu3 %v160_v54 }
  0x30   :  { %220 = vmatpush.msra.mxu0 %v111_v55  ;;  %240 = vmatpush.msra.mxu1 %v127_v56 }
  0x31   :  { %260 = vmatpush.msra.mxu2 %v143_v57  ;;  %280 = vmatpush.msra.mxu3 %v159_v58 }
  0x32   :  { %221 = vmatpush.msra.mxu0 %v110_v59  ;;  %241 = vmatpush.msra.mxu1 %v126_v60 }
  0x33   :  { %261 = vmatpush.msra.mxu2 %v142_v61  ;;  %281 = vmatpush.msra.mxu3 %v158_v62 }
  0x34   :  { %222 = vmatpush.msra.mxu0 %v109_v63  ;;  %242 = vmatpush.msra.mxu1 %v125_v0 }
  0x35   :  { %262 = vmatpush.msra.mxu2 %v141_v1  ;;  %282 = vmatpush.msra.mxu3 %v157_v2 }
  0x87   :  { %v181_v3 = vpop.permute.xlu0 %180 }
  0x88   :  { %v183_v19 = vmul.f32 %v181_v3, %v80_v6  ;;  %v184_v20 = vmul.f32 %v181_v3, %v81_v7  ;;  %v185_v21 = vmul.f32 %v181_v3, %v82_v8  ;;  %v186_v22 = vmul.f32 %v181_v3, %v83_v9 }
  0x90   :  { %v189_v23 = vpop.permute.xlu0 %188 }
  0x91   :  { %v191_v24 = vmul.f32 %v189_v23, %v91_v11  ;;  %v192_v25 = vmul.f32 %v189_v23, %v92_v12  ;;  %v193_v26 = vmul.f32 %v189_v23, %v93_v13  ;;  %v194_v27 = vmul.f32 %v189_v23, %v94_v14 }
  0x93   :  { %v195_v28 = vadd.f32 %v191_v24, %v183_v19  ;;  %v196_v29 = vadd.f32 %v192_v25, %v184_v20  ;;  %v197_v30 = vadd.f32 %v193_v26, %v185_v21  ;;  %v198_v31 = vadd.f32 %v194_v27, %v186_v22 }
  0x95   :  { %v199_v32 = vadd.f32 %v195_v28, %v101_v15  ;;  %v200_v33 = vadd.f32 %v196_v29, %v102_v16  ;;  %v201_v34 = vadd.f32 %v197_v30, %v103_v17  ;;  %v202_v35 = vadd.f32 %v198_v31, %v104_v18 }
  0x97   :  { %v203_v36 = vmax.f32 %v199_v32, 0.0  ;;  %v204_v37 = vmax.f32 %v200_v33, 0.0  ;;  %v205_v38 = vmax.f32 %v201_v34, 0.0  ;;  %v206_v39 = vmax.f32 %v202_v35, 0.0 }
  0x99   :  { %223 = vmatmul.f32.vlgmr.msra.gmra.mxu0 %v203_v36  ;;  %243 = vmatmul.f32.vlgmr.msra.gmra.mxu1 %v204_v37 }
  0x9a   :  { %263 = vmatmul.f32.vlgmr.msra.gmra.mxu2 %v205_v38  ;;  %283 = vmatmul.f32.vlgmr.msra.gmra.mxu3 %v206_v39 }
 0x116   :  { %v224_v41 = vpop.f32.mrf.mxu0  ;;  %v244_v43 = vpop.f32.mrf.mxu1 }
 0x117   :  { %v225_v42 = vadd.f32 %v318_v40, %v224_v41 }
 0x119   :  { %v245_v44 = vadd.f32 %v244_v43, %v225_v42 }
 0x11d   :  { %v264_v45 = vpop.f32.mrf.mxu2  ;;  %v284_v47 = vpop.f32.mrf.mxu3 }
 0x11e   :  { %v265_v46 = vadd.f32 %v264_v45, %v245_v44 }
 0x120   :  { %v285_v48 = vadd.f32 %v284_v47, %v265_v46 }
 0x122   :  { %287 = vst [vmem:[#allocation10] sm:$0xff] %v285_v48 }
 0x123   :  { %298 = dma.vmem_to_hbm [thread:$0]  %s294_s14, 128, %s296_s17, [#allocation4]  }
 0x124   :  { %445 = dma.done.wait [#allocation4], 128  }
 0x125   :  { %446 = vsyncadd [#allocation4], 4294967168 }
 0x126   :  { %303 = vsyncpa [#allocation3], 1 }
 0x127   :  { %304 = vsyncpa [#allocation6], 1 }
 0x128   :  { %305 = vsyncpa [#allocation9], 1 }
 0x129   :  { %306 = vsyncpa [#allocation4], 1 }

</bundles_post_ra>
